<compile_context>
chip_gen: v6e
topology: v6e:2x2x1
jax: 0.10.0
libtpu: 0.0.40
codegen_flags: <defaults>
</compile_context>

<pallas_src>
import functools

import jax
import jax.numpy as jnp
from jax import lax
from jax.experimental import pallas as pl
from jax.experimental.pallas import tpu as pltpu


# ----------------------------------------------------------------------------
# Pallas kernel: whole forward fused (all operands resident in VMEM).
# ----------------------------------------------------------------------------
def _gcn_skip_kernel(x_ref, a_ref, w0_ref, b0_ref, wg_ref, shift_ref,
                     wl_ref, bl_ref, o_ref, skip_ref, acc_ref,
                     *, num_gcn, skip_coefficient):
    # Linear_in with BN0 folded in, then relu.  x_skip is parked in VMEM scratch
    # (not held live in vregs across the unrolled layer loop).
    h0 = jnp.dot(x_ref[...], w0_ref[...], preferred_element_type=jnp.float32)
    skip_ref[...] = jnp.maximum(h0 + b0_ref[...], 0.0)
    acc_ref[...] = jnp.zeros_like(acc_ref)

    h = skip_ref[...]
    for i in range(num_gcn):
        # GCNConv with the eval-mode BN folded into the weight columns and a
        # per-layer shift vector.  Both matmul operands are bf16, accumulate f32.
        t = jnp.dot(h.astype(jnp.bfloat16), wg_ref[i],
                    preferred_element_type=jnp.float32)
        h = jnp.dot(a_ref[...], t.astype(jnp.bfloat16),
                    preferred_element_type=jnp.float32) + shift_ref[i]
        # skip connection + relu (dropout is identity in eval mode).
        h = jnp.maximum(h + skip_coefficient * skip_ref[...], 0.0)
        acc_ref[...] = acc_ref[...] + h

    # Linear_out on the accumulated per-layer outputs (lane-dense padded output).
    o_ref[...] = (jnp.dot(acc_ref[...].astype(jnp.bfloat16), wl_ref[...],
                          preferred_element_type=jnp.float32)
                  + bl_ref[...]).astype(o_ref.dtype)


# ----------------------------------------------------------------------------
# Host-side folding / padding / packing and the pallas_call wrapper.
# ----------------------------------------------------------------------------
def _round_up(v, m):
    return ((v + m - 1) // m) * m


def _pad2(a, rows, cols):
    return jnp.pad(a, ((0, rows - a.shape[0]), (0, cols - a.shape[1])))


def _fold_bn(w, b, gamma, beta, rm, rv, eps):
    """Fold eval-mode BN (running stats) + bias into weight columns / shift."""
    s = gamma / jnp.sqrt(rv + eps)           # [H]
    return w * s[None, :], (b - rm) * s + beta


def gcn_skip_forward(x, a_hat, params, *, num_gcn, skip_coefficient, eps=1e-5):
    n, in_ch = x.shape
    hidden = params["w0"].shape[1]
    out_ch = params["w_last"].shape[1]
    assert n % 8 == 0 and num_gcn >= 1

    in_p = _round_up(in_ch, 128)
    h_p = _round_up(hidden, 128)
    out_p = _round_up(out_ch, 128)

    # Fold BN0 into the input linear layer.
    bn0 = params["bn0"]
    w0f, b0f = _fold_bn(params["w0"], params["b0"], bn0["gamma"], bn0["beta"],
                        bn0["rm"], bn0["rv"], eps)

    # Fold each GCN layer's BN + bias, pad to 128 lanes, stack.
    wg_l, sh_l = [], []
    for lp in params["gcn"]:
        wgf, shf = _fold_bn(lp["wg"], lp["bg"], lp["gamma"], lp["beta"],
                            lp["rm"], lp["rv"], eps)
        wg_l.append(_pad2(wgf, h_p, h_p))
        sh_l.append(_pad2(shf[None, :], 1, h_p))
    wg_all = jnp.stack(wg_l).astype(jnp.bfloat16)        # [G, h_p, h_p]
    shift_all = jnp.stack(sh_l).astype(jnp.float32)      # [G, 1,  h_p]

    # Pad to lane-dense shapes; bf16 for matmul operands, f32 for shifts/biases.
    x_p = _pad2(x, n, in_p).astype(jnp.bfloat16)
    a_bf = a_hat.astype(jnp.bfloat16)
    w0_p = _pad2(w0f, in_p, h_p).astype(jnp.bfloat16)
    b0_p = _pad2(b0f[None, :], 1, h_p).astype(jnp.float32)
    wl_p = _pad2(params["w_last"], h_p, out_p).astype(jnp.bfloat16)
    bl_p = _pad2(params["b_last"][None, :], 1, out_p).astype(jnp.float32)

    vmem = pl.BlockSpec(memory_space=pltpu.MemorySpace.VMEM)
    kernel = functools.partial(_gcn_skip_kernel, num_gcn=num_gcn,
                               skip_coefficient=float(skip_coefficient))

    out_full = pl.pallas_call(
        kernel,
        out_shape=jax.ShapeDtypeStruct((n, out_p), jnp.float32),
        in_specs=[vmem] * 8,
        out_specs=vmem,
        scratch_shapes=[pltpu.VMEM((n, h_p), jnp.float32),   # x_skip
                        pltpu.VMEM((n, h_p), jnp.float32)],  # acc
    )(x_p, a_bf, w0_p, b0_p, wg_all, shift_all, wl_p, bl_p)

    return out_full[:, :out_ch]


# ----------------------------------------------------------------------------
# Glue: dense normalized adjacency (PyG gcn_norm semantics) and parameters.
# ----------------------------------------------------------------------------
def build_normalized_adjacency(edge_index, num_nodes):
    src, dst = edge_index[0], edge_index[1]
    a = jnp.zeros((num_nodes, num_nodes), jnp.float32)
    a = a.at[dst, src].add(1.0)                       # messages flow src -> dst
    a = a + jnp.eye(num_nodes, dtype=jnp.float32)     # self loops
    deg = a.sum(axis=1)
    dinv = jnp.where(deg > 0, lax.rsqrt(deg), 0.0)
    return dinv[:, None] * a * dinv[None, :]


def init_params(key, in_channels, hidden, out_channels, num_gcn):
    ks = iter(jax.random.split(key, 8 + 8 * num_gcn))

    def lin(k, cin, cout, scale=0.1):
        # stored pre-transposed: y = x @ W   (W is [cin, cout])
        return scale * jax.random.normal(k, (cin, cout), jnp.float32)

    def bn(kg, kb, km, kv, h):
        return {
            "gamma": 1.0 + 0.05 * jax.random.normal(kg, (h,), jnp.float32),
            "beta": 0.05 * jax.random.normal(kb, (h,), jnp.float32),
            "rm": 0.1 * jax.random.normal(km, (h,), jnp.float32),
            "rv": 1.0 + 0.1 * jnp.abs(jax.random.normal(kv, (h,), jnp.float32)),
        }

    params = {
        "w0": lin(next(ks), in_channels, hidden),
        "b0": 0.01 * jax.random.normal(next(ks), (hidden,), jnp.float32),
        "bn0": bn(next(ks), next(ks), next(ks), next(ks), hidden),
        "gcn": [],
        "w_last": lin(next(ks), hidden, out_channels),
        "b_last": 0.01 * jax.random.normal(next(ks), (out_channels,),
                                           jnp.float32),
    }
    for _ in range(num_gcn):
        layer = {
            "wg": lin(next(ks), hidden, hidden),
            "bg": 0.01 * jax.random.normal(next(ks), (hidden,), jnp.float32),
        }
        layer.update(bn(next(ks), next(ks), next(ks), next(ks), hidden))
        params["gcn"].append(layer)
    return params


def reference_forward(x, a_hat, params, *, num_gcn, skip_coefficient, eps=1e-5):
    """Pure f32 reference matching the PyTorch module (eval mode)."""
    def bn(h, p):
        return (h - p["rm"]) / jnp.sqrt(p["rv"] + eps) * p["gamma"] + p["beta"]

    h = x @ params["w0"] + params["b0"]
    h = jnp.maximum(bn(h, params["bn0"]), 0.0)
    x_skip = h
    acc = jnp.zeros_like(h)
    for i in range(num_gcn):
        lp = params["gcn"][i]
        h = a_hat @ (h @ lp["wg"]) + lp["bg"]
        h = bn(h, lp)
        h = jnp.maximum(h + skip_coefficient * x_skip, 0.0)
        acc = acc + h
    return acc @ params["w_last"] + params["b_last"]


# ----------------------------------------------------------------------------
if __name__ == "__main__":
    N = 128            # nodes (multiple of 8 sublanes)
    IN_CH = 16
    HIDDEN = 32
    OUT_CH = 8
    NUM_LAYERS = 4     # -> 2 GCNConv layers
    NUM_GCN = NUM_LAYERS - 2
    SKIP_COEF = 0.5
    NUM_EDGES = 256

    key = jax.random.PRNGKey(0)
    kx, ke, kp = jax.random.split(key, 3)

    x = jax.random.normal(kx, (N, IN_CH), jnp.float32)
    edge_index = jax.random.randint(ke, (2, NUM_EDGES), 0, N, jnp.int32)

    a_hat = build_normalized_adjacency(edge_index, N)
    params = init_params(kp, IN_CH, HIDDEN, OUT_CH, NUM_GCN)

    out = gcn_skip_forward(x, a_hat, params,
                           num_gcn=NUM_GCN, skip_coefficient=SKIP_COEF)
    out = jax.block_until_ready(out)

    ref = reference_forward(x, a_hat, params,
                            num_gcn=NUM_GCN, skip_coefficient=SKIP_COEF)
    assert out.shape == (N, OUT_CH)
    # Tolerance covers bf16 matmul operands (f32 accumulation); real bugs give
    # errors orders of magnitude larger.
    assert jnp.allclose(out, ref, atol=3e-2, rtol=3e-2), \
        float(jnp.max(jnp.abs(out - ref)))

    print("KERNEL_OK")
</pallas_src>

<mosaic_0001>
module attributes {stable_mosaic.version = 11 : i64} {
  func.func @_gcn_skip_kernel(%arg0: memref<128x128xbf16, #tpu.memory_space<vmem>>, %arg1: memref<128x128xbf16, #tpu.memory_space<vmem>>, %arg2: memref<128x128xbf16, #tpu.memory_space<vmem>>, %arg3: memref<1x128xf32, #tpu.memory_space<vmem>>, %arg4: memref<2x128x128xbf16, #tpu.memory_space<vmem>>, %arg5: memref<2x1x128xf32, #tpu.memory_space<vmem>>, %arg6: memref<128x128xbf16, #tpu.memory_space<vmem>>, %arg7: memref<1x128xf32, #tpu.memory_space<vmem>>, %arg8: memref<128x128xf32, #tpu.memory_space<vmem>>, %arg9: memref<128x128xf32, #tpu.memory_space<vmem>>, %arg10: memref<128x128xf32, #tpu.memory_space<vmem>>) attributes {dimension_semantics = [], scalar_prefetch = 0 : i64, scratch_operands = 2 : i64, tpu.core_type = #tpu.core_type<tc>} {
    %c0 = arith.constant 0 : index
    %c0_0 = arith.constant 0 : index
    %0 = vector.load %arg0[%c0, %c0_0] : memref<128x128xbf16, #tpu.memory_space<vmem>>, vector<128x128xbf16>
    %c0_1 = arith.constant 0 : index
    %c0_2 = arith.constant 0 : index
    %1 = vector.load %arg2[%c0_1, %c0_2] : memref<128x128xbf16, #tpu.memory_space<vmem>>, vector<128x128xbf16>
    %cst = arith.constant dense<0.000000e+00> : vector<128x128xf32>
    %2 = tpu.matmul %0, %1, %cst {dimension_numbers = #tpu.dot_dimension_numbers<[1], [0], [0], [1], [0, 0, 1, 1], [], []>} : vector<128x128xbf16>, vector<128x128xbf16>, vector<128x128xf32> -> vector<128x128xf32>
    %c0_3 = arith.constant 0 : index
    %c0_4 = arith.constant 0 : index
    %3 = vector.load %arg3[%c0_3, %c0_4] : memref<1x128xf32, #tpu.memory_space<vmem>>, vector<1x128xf32>
    %4 = vector.broadcast %3 : vector<1x128xf32> to vector<128x128xf32>
    %5 = arith.addf %2, %4 : vector<128x128xf32>
    %cst_5 = arith.constant 0.000000e+00 : f32
    %6 = vector.broadcast %cst_5 : f32 to vector<128x128xf32>
    %7 = arith.maximumf %5, %6 : vector<128x128xf32>
    %c0_6 = arith.constant 0 : index
    %c0_7 = arith.constant 0 : index
    %8 = vector.load %arg9[%c0_6, %c0_7] : memref<128x128xf32, #tpu.memory_space<vmem>>, vector<128x128xf32>
    tpu.vector_store %arg9[%c0_6, %c0_7], %7 {strides = array<i32>} : memref<128x128xf32, #tpu.memory_space<vmem>>, vector<128x128xf32>,
    %cst_8 = arith.constant 0.000000e+00 : f32
    %9 = vector.broadcast %cst_8 : f32 to vector<128x128xf32>
    %c0_9 = arith.constant 0 : index
    %c0_10 = arith.constant 0 : index
    %10 = vector.load %arg10[%c0_9, %c0_10] : memref<128x128xf32, #tpu.memory_space<vmem>>, vector<128x128xf32>
    tpu.vector_store %arg10[%c0_9, %c0_10], %9 {strides = array<i32>} : memref<128x128xf32, #tpu.memory_space<vmem>>, vector<128x128xf32>,
    %c0_11 = arith.constant 0 : index
    %c0_12 = arith.constant 0 : index
    %11 = vector.load %arg9[%c0_11, %c0_12] : memref<128x128xf32, #tpu.memory_space<vmem>>, vector<128x128xf32>
    %12 = arith.truncf %11 : vector<128x128xf32> to vector<128x128xbf16>
    %c0_13 = arith.constant 0 : index
    %c0_14 = arith.constant 0 : index
    %c0_15 = arith.constant 0 : index
    %13 = vector.load %arg4[%c0_13, %c0_14, %c0_15] : memref<2x128x128xbf16, #tpu.memory_space<vmem>>, vector<1x128x128xbf16>
    %14 = vector.shape_cast %13 : vector<1x128x128xbf16> to vector<128x128xbf16>
    %cst_16 = arith.constant dense<0.000000e+00> : vector<128x128xf32>
    %15 = tpu.matmul %12, %14, %cst_16 {dimension_numbers = #tpu.dot_dimension_numbers<[1], [0], [0], [1], [0, 0, 1, 1], [], []>} : vector<128x128xbf16>, vector<128x128xbf16>, vector<128x128xf32> -> vector<128x128xf32>
    %c0_17 = arith.constant 0 : index
    %c0_18 = arith.constant 0 : index
    %16 = vector.load %arg1[%c0_17, %c0_18] : memref<128x128xbf16, #tpu.memory_space<vmem>>, vector<128x128xbf16>
    %17 = arith.truncf %15 : vector<128x128xf32> to vector<128x128xbf16>
    %cst_19 = arith.constant dense<0.000000e+00> : vector<128x128xf32>
    %18 = tpu.matmul %16, %17, %cst_19 {dimension_numbers = #tpu.dot_dimension_numbers<[1], [0], [0], [1], [0, 0, 1, 1], [], []>} : vector<128x128xbf16>, vector<128x128xbf16>, vector<128x128xf32> -> vector<128x128xf32>
    %c0_20 = arith.constant 0 : index
    %c0_21 = arith.constant 0 : index
    %c0_22 = arith.constant 0 : index
    %19 = vector.load %arg5[%c0_20, %c0_21, %c0_22] : memref<2x1x128xf32, #tpu.memory_space<vmem>>, vector<1x1x128xf32>
    %20 = vector.shape_cast %19 : vector<1x1x128xf32> to vector<1x128xf32>
    %21 = vector.broadcast %20 : vector<1x128xf32> to vector<128x128xf32>
    %22 = arith.addf %18, %21 : vector<128x128xf32>
    %c0_23 = arith.constant 0 : index
    %c0_24 = arith.constant 0 : index
    %23 = vector.load %arg9[%c0_23, %c0_24] : memref<128x128xf32, #tpu.memory_space<vmem>>, vector<128x128xf32>
    %cst_25 = arith.constant 5.000000e-01 : f32
    %24 = vector.broadcast %cst_25 : f32 to vector<128x128xf32>
    %25 = arith.mulf %24, %23 : vector<128x128xf32>
    %26 = arith.addf %22, %25 : vector<128x128xf32>
    %cst_26 = arith.constant 0.000000e+00 : f32
    %27 = vector.broadcast %cst_26 : f32 to vector<128x128xf32>
    %28 = arith.maximumf %26, %27 : vector<128x128xf32>
    %c0_27 = arith.constant 0 : index
    %c0_28 = arith.constant 0 : index
    %29 = vector.load %arg10[%c0_27, %c0_28] : memref<128x128xf32, #tpu.memory_space<vmem>>, vector<128x128xf32>
    %30 = arith.addf %29, %28 : vector<128x128xf32>
    %c0_29 = arith.constant 0 : index
    %c0_30 = arith.constant 0 : index
    %31 = vector.load %arg10[%c0_29, %c0_30] : memref<128x128xf32, #tpu.memory_space<vmem>>, vector<128x128xf32>
    tpu.vector_store %arg10[%c0_29, %c0_30], %30 {strides = array<i32>} : memref<128x128xf32, #tpu.memory_space<vmem>>, vector<128x128xf32>,
    %32 = arith.truncf %28 : vector<128x128xf32> to vector<128x128xbf16>
    %c1 = arith.constant 1 : index
    %c0_31 = arith.constant 0 : index
    %c0_32 = arith.constant 0 : index
    %33 = vector.load %arg4[%c1, %c0_31, %c0_32] : memref<2x128x128xbf16, #tpu.memory_space<vmem>>, vector<1x128x128xbf16>
    %34 = vector.shape_cast %33 : vector<1x128x128xbf16> to vector<128x128xbf16>
    %cst_33 = arith.constant dense<0.000000e+00> : vector<128x128xf32>
    %35 = tpu.matmul %32, %34, %cst_33 {dimension_numbers = #tpu.dot_dimension_numbers<[1], [0], [0], [1], [0, 0, 1, 1], [], []>} : vector<128x128xbf16>, vector<128x128xbf16>, vector<128x128xf32> -> vector<128x128xf32>
    %c0_34 = arith.constant 0 : index
    %c0_35 = arith.constant 0 : index
    %36 = vector.load %arg1[%c0_34, %c0_35] : memref<128x128xbf16, #tpu.memory_space<vmem>>, vector<128x128xbf16>
    %37 = arith.truncf %35 : vector<128x128xf32> to vector<128x128xbf16>
    %cst_36 = arith.constant dense<0.000000e+00> : vector<128x128xf32>
    %38 = tpu.matmul %36, %37, %cst_36 {dimension_numbers = #tpu.dot_dimension_numbers<[1], [0], [0], [1], [0, 0, 1, 1], [], []>} : vector<128x128xbf16>, vector<128x128xbf16>, vector<128x128xf32> -> vector<128x128xf32>
    %c1_37 = arith.constant 1 : index
    %c0_38 = arith.constant 0 : index
    %c0_39 = arith.constant 0 : index
    %39 = vector.load %arg5[%c1_37, %c0_38, %c0_39] : memref<2x1x128xf32, #tpu.memory_space<vmem>>, vector<1x1x128xf32>
    %40 = vector.shape_cast %39 : vector<1x1x128xf32> to vector<1x128xf32>
    %41 = vector.broadcast %40 : vector<1x128xf32> to vector<128x128xf32>
    %42 = arith.addf %38, %41 : vector<128x128xf32>
    %c0_40 = arith.constant 0 : index
    %c0_41 = arith.constant 0 : index
    %43 = vector.load %arg9[%c0_40, %c0_41] : memref<128x128xf32, #tpu.memory_space<vmem>>, vector<128x128xf32>
    %cst_42 = arith.constant 5.000000e-01 : f32
    %44 = vector.broadcast %cst_42 : f32 to vector<128x128xf32>
    %45 = arith.mulf %44, %43 : vector<128x128xf32>
    %46 = arith.addf %42, %45 : vector<128x128xf32>
    %cst_43 = arith.constant 0.000000e+00 : f32
    %47 = vector.broadcast %cst_43 : f32 to vector<128x128xf32>
    %48 = arith.maximumf %46, %47 : vector<128x128xf32>
    %c0_44 = arith.constant 0 : index
    %c0_45 = arith.constant 0 : index
    %49 = vector.load %arg10[%c0_44, %c0_45] : memref<128x128xf32, #tpu.memory_space<vmem>>, vector<128x128xf32>
    %50 = arith.addf %49, %48 : vector<128x128xf32>
    %c0_46 = arith.constant 0 : index
    %c0_47 = arith.constant 0 : index
    %51 = vector.load %arg10[%c0_46, %c0_47] : memref<128x128xf32, #tpu.memory_space<vmem>>, vector<128x128xf32>
    tpu.vector_store %arg10[%c0_46, %c0_47], %50 {strides = array<i32>} : memref<128x128xf32, #tpu.memory_space<vmem>>, vector<128x128xf32>,
    %c0_48 = arith.constant 0 : index
    %c0_49 = arith.constant 0 : index
    %52 = vector.load %arg10[%c0_48, %c0_49] : memref<128x128xf32, #tpu.memory_space<vmem>>, vector<128x128xf32>
    %53 = arith.truncf %52 : vector<128x128xf32> to vector<128x128xbf16>
    %c0_50 = arith.constant 0 : index
    %c0_51 = arith.constant 0 : index
    %54 = vector.load %arg6[%c0_50, %c0_51] : memref<128x128xbf16, #tpu.memory_space<vmem>>, vector<128x128xbf16>
    %cst_52 = arith.constant dense<0.000000e+00> : vector<128x128xf32>
    %55 = tpu.matmul %53, %54, %cst_52 {dimension_numbers = #tpu.dot_dimension_numbers<[1], [0], [0], [1], [0, 0, 1, 1], [], []>} : vector<128x128xbf16>, vector<128x128xbf16>, vector<128x128xf32> -> vector<128x128xf32>
    %c0_53 = arith.constant 0 : index
    %c0_54 = arith.constant 0 : index
    %56 = vector.load %arg7[%c0_53, %c0_54] : memref<1x128xf32, #tpu.memory_space<vmem>>, vector<1x128xf32>
    %57 = vector.broadcast %56 : vector<1x128xf32> to vector<128x128xf32>
    %58 = arith.addf %55, %57 : vector<128x128xf32>
    %c0_55 = arith.constant 0 : index
    %c0_56 = arith.constant 0 : index
    %59 = vector.load %arg8[%c0_55, %c0_56] : memref<128x128xf32, #tpu.memory_space<vmem>>, vector<128x128xf32>
    tpu.vector_store %arg8[%c0_55, %c0_56], %58 {strides = array<i32>} : memref<128x128xf32, #tpu.memory_space<vmem>>, vector<128x128xf32>,
    return
  }
}

</mosaic_0001>

<bundles_post_ra>
// kernel: tpu_custom_call.1
= control target key start
LH: loop header
LB: loop body
LE: loop exit
PB: predicated region body
PF: predicated region fallthrough
CT: control target
= control target key end

     0   :  { %13 = vsyncpa [#allocation5], 0  ;;  %s2489_s0 = inlined_call_operand.hbm [shape: bf16[128,128], index: 0, kind: input, shape index: {}]   ;;  %s2490_s1 = inlined_call_operand.hbm [shape: bf16[128,128], index: 1, kind: input, shape index: {}]   ;;  %s2491_s2 = inlined_call_operand.hbm [shape: bf16[128,128], index: 2, kind: input, shape index: {}]   ;;  %s2492_s3 = inlined_call_operand.vmem [shape: f32[1,128], index: 3, kind: input, shape index: {}]   ;;  %s2493_s4 = inlined_call_operand.hbm [shape: bf16[2,128,128], index: 4, kind: input, shape index: {}]   ;;  %s2494_s5 = inlined_call_operand.vmem [shape: f32[2,1,128], index: 5, kind: input, shape index: {}]   ;;  %s2495_s6 = inlined_call_operand.hbm [shape: bf16[128,128], index: 6, kind: input, shape index: {}]   ;;  %s2496_s7 = inlined_call_operand.vmem [shape: f32[1,128], index: 7, kind: input, shape index: {}]   ;;  %s2497_s8 = inlined_call_operand.hbm [shape: f32[128,128], index: 8, kind: output, shape index: {}]  }
   0x1   :  { %14 = vsyncpa [#allocation8], 0 }
   0x2   :  { %15 = vsyncpa [#allocation11], 0 }
   0x3   :  { %16 = vsyncpa [#allocation6], 0  ;;  %s2065_s27 = smov [#allocation7]   ;;  %s2066_s29 = smov [#allocation10]  }
   0x4   :  { %s34_s28 = sshll.u32 %s2065_s27, 4  ;;  %s60_s30 = sshll.u32 %s2066_s29, 4  ;;  %s35_s28 = int_to_ptr.vmem [resolvable:$true] %s34_s28  ;;  %s61_s30 = int_to_ptr.vmem [resolvable:$true] %s60_s30 }
   0x5   :  { %s1945_s9 = scalar_lea.vmem %s35_s28, 1024  ;;  %p1950_p1 = scmp.lt.s32.totalorder %s35_s28, %s35_s28 }
   0x6   :  { %p1946_p0 = scmp.ne.s32.totalorder %s35_s28, %s1945_s9  ;;  %p1951_p2 = scmp.lt.s32.totalorder %s1945_s9, %s1945_s9 }
   0x8   :  { %p1952_p3 = por %p1951_p2, %p1950_p1 }
   0xa   :  { %p1953_p4 = pnand %p1952_p3, %p1946_p0 }
   0xc   :  { %1956 = shalt.err (!%p1953_p4)
}
   0xd   :  { %s2067_s10 = smov 64   ;;  %s2068_s11 = smov 4  }
   0xe   :  { %40 = dma.hbm_to_vmem [thread:$0]  %s2490_s1, 1024, %s35_s28, [#allocation8], %s2067_s10, %s2067_s10, %s2068_s11  }
   0xf   :  { %s1965_s14 = scalar_lea.vmem %s61_s30, 2048  ;;  %p1970_p6 = scmp.lt.s32.totalorder %s61_s30, %s61_s30 }
  0x10   :  { %p1966_p5 = scmp.ne.s32.totalorder %s61_s30, %s1965_s14  ;;  %p1971_p7 = scmp.lt.s32.totalorder %s1965_s14, %s1965_s14 }
  0x12   :  { %p1972_p8 = por %p1971_p7, %p1970_p6 }
  0x14   :  { %p1973_p9 = pnand %p1972_p8, %p1966_p5 }
  0x16   :  { %1976 = shalt.err (!%p1973_p9)
}
  0x17   :  { %66 = dma.hbm_to_vmem [thread:$0]  %s2493_s4, 2048, %s61_s30, [#allocation11], %s2067_s10, %s2067_s10, %s2068_s11  }
  0x18   :  { %s2069_s17 = smov [#allocation4]   ;;  %s2070_s19 = smov [#allocation9]  }
  0x19   :  { %s22_s18 = sshll.u32 %s2069_s17, 4  ;;  %s46_s20 = sshll.u32 %s2070_s19, 4  ;;  %s23_s18 = int_to_ptr.vmem [resolvable:$true] %s22_s18  ;;  %s47_s20 = int_to_ptr.vmem [resolvable:$true] %s46_s20 }
  0x1a   :  { %s1985_s1 = scalar_lea.vmem %s23_s18, 1024  ;;  %p1990_p11 = scmp.lt.s32.totalorder %s23_s18, %s23_s18 }
  0x1b   :  { %p1986_p10 = scmp.ne.s32.totalorder %s23_s18, %s1985_s1  ;;  %p1991_p12 = scmp.lt.s32.totalorder %s1985_s1, %s1985_s1 }
  0x1d   :  { %p1992_p13 = por %p1991_p12, %p1990_p11 }
  0x1f   :  { %p1993_p0 = pnand %p1992_p13, %p1986_p10 }
  0x21   :  { %1996 = shalt.err (!%p1993_p0)
}
  0x22   :  { %28 = dma.hbm_to_vmem [thread:$0]  %s2489_s0, 1024, %s23_s18, [#allocation5], %s2067_s10, %s2067_s10, %s2068_s11  }
  0x23   :  { %s2005_s4 = scalar_lea.vmem %s47_s20, 1024  ;;  %p2010_p2 = scmp.lt.s32.totalorder %s47_s20, %s47_s20 }
  0x24   :  { %p2006_p1 = scmp.ne.s32.totalorder %s47_s20, %s2005_s4  ;;  %p2011_p3 = scmp.lt.s32.totalorder %s2005_s4, %s2005_s4 }
  0x26   :  { %p2012_p4 = por %p2011_p3, %p2010_p2 }
  0x28   :  { %p2013_p5 = pnand %p2012_p4, %p2006_p1 }
  0x2a   :  { %2016 = shalt.err (!%p2013_p5)
}
  0x2b   :  { %52 = dma.hbm_to_vmem [thread:$0]  %s2491_s2, 1024, %s47_s20, [#allocation8], %s2067_s10, %s2067_s10, %s2068_s11  }
  0x2c   :  { %s2071_s25 = smov [#allocation12]  }
  0x2d   :  { %s74_s26 = sshll.u32 %s2071_s25, 4  ;;  %s75_s26 = int_to_ptr.vmem [resolvable:$true] %s74_s26 }
  0x2e   :  { %s2025_s27 = scalar_lea.vmem %s75_s26, 1024  ;;  %p2030_p7 = scmp.lt.s32.totalorder %s75_s26, %s75_s26 }
  0x2f   :  { %p2026_p6 = scmp.ne.s32.totalorder %s75_s26, %s2025_s27  ;;  %p2031_p8 = scmp.lt.s32.totalorder %s2025_s27, %s2025_s27 }
  0x31   :  { %p2032_p9 = por %p2031_p8, %p2030_p7 }
  0x33   :  { %p2033_p10 = pnand %p2032_p9, %p2026_p6 }
  0x35   :  { %2036 = shalt.err (!%p2033_p10)
}
  0x36   :  { %80 = dma.hbm_to_vmem [thread:$0]  %s2495_s6, 1024, %s75_s26, [#allocation11], %s2067_s10, %s2067_s10, %s2068_s11  }
  0x37   :  { %2057 = dma.done.wait [#allocation5], 1024  }
  0x38   :  { %2058 = vsyncadd [#allocation5], 4294966272 }
  0x39   :  { %2059 = dma.done.wait [#allocation8], 2048  }
  0x3a   :  { %2060 = vsyncadd [#allocation8], 4294965248 }
  0x3b   :  { %2061 = dma.done.wait [#allocation11], 3072  }
  0x3c   :  { %2062 = vsyncadd [#allocation11], 4294964224  ;;  %v1881_v0 = vld [vmem:[#allocation9 + $0x38] sm:$0xff]   ;;  %v1882_v1 = vld [vmem:[#allocation9 + $0x30] sm:$0xff]  }
  0x3d   :  { %1679 = vmatprep.subr.bf16.mxu0 %v1881_v0  ;;  %v1883_v2 = vld [vmem:[#allocation9 + $0x28] sm:$0xff]   ;;  %v1884_v3 = vld [vmem:[#allocation9 + $0x20] sm:$0xff]   ;;  %v1885_v5 = vld [vmem:[#allocation9 + $0x18] sm:$0xff]  }
  0x3e   :  { %1680 = vmatpush3.bf16.msra.mxu0 %v1881_v0  ;;  %v1889_v4 = vld [vmem:[#allocation4] sm:$0xff]   ;;  %v1886_v6 = vld [vmem:[#allocation9 + $0x10] sm:$0xff]   ;;  %v1897_v7 = vld [vmem:[#allocation10 + $0x38] sm:$0xff]  }
  0x3f   :  { %1681 = vmatprep.subr.bf16.mxu0 %v1882_v1  ;;  %1695 = vmatprep.mubr.bf16.mxu0 %v1889_v4  ;;  %v1898_v8 = vld [vmem:[#allocation10 + $0x30] sm:$0xff]   ;;  %v1887_v9 = vld [vmem:[#allocation9 + $0x8] sm:$0xff]   ;;  %v1888_v11 = vld [vmem:[#allocation9] sm:$0xff]  }
  0x40   :  { %1711 = vmatprep.subr.bf16.mxu1 %v1897_v7  ;;  %v1899_v10 = vld [vmem:[#allocation10 + $0x28] sm:$0xff]   ;;  %v1900_v12 = vld [vmem:[#allocation10 + $0x20] sm:$0xff]   ;;  %v1901_v13 = vld [vmem:[#allocation10 + $0x18] sm:$0xff]  }
  0x41   :  { %1712 = vmatpush3.bf16.msra.mxu1 %v1897_v7  ;;  %v1890_v14 = vld [vmem:[#allocation4 + $0x8] sm:$0xff]   ;;  %v1891_v15 = vld [vmem:[#allocation4 + $0x10] sm:$0xff]   ;;  %v1892_v16 = vld [vmem:[#allocation4 + $0x18] sm:$0xff]  }
  0x42   :  { %1682 = vmatpush3.bf16.msra.mxu0 %v1882_v1  ;;  %1713 = vmatprep.subr.bf16.mxu1 %v1898_v8  ;;  %v1893_v17 = vld [vmem:[#allocation4 + $0x20] sm:$0xff]   ;;  %v1894_v18 = vld [vmem:[#allocation4 + $0x28] sm:$0xff]   ;;  %v1895_v19 = vld [vmem:[#allocation4 + $0x30] sm:$0xff]  }
  0x43   :  { %1683 = vmatprep.subr.bf16.mxu0 %v1883_v2  ;;  %v1896_v20 = vld [vmem:[#allocation4 + $0x38] sm:$0xff]   ;;  %v1902_v21 = vld [vmem:[#allocation10 + $0x10] sm:$0xff]   ;;  %v1903_v22 = vld [vmem:[#allocation10 + $0x8] sm:$0xff]  }
  0x44   :  { %v1904_v23 = vld [vmem:[#allocation10] sm:$0xff]  }
  0x45   :  { %1714 = vmatpush3.bf16.msra.mxu1 %v1898_v8  ;;  %v1522_v26 = vld [vmem:[%s2492_s3] ss:$0 sm:$0xff] }
  0x46   :  { %1684 = vmatpush3.bf16.msra.mxu0 %v1883_v2  ;;  %1715 = vmatprep.subr.bf16.mxu1 %v1899_v10 }
  0x47   :  { %1685 = vmatprep.subr.bf16.mxu0 %v1884_v3 }
  0x49   :  { %1716 = vmatpush3.bf16.msra.mxu1 %v1899_v10 }
  0x4a   :  { %1686 = vmatpush3.bf16.msra.mxu0 %v1884_v3  ;;  %1717 = vmatprep.subr.bf16.mxu1 %v1900_v12 }
  0x4b   :  { %1687 = vmatprep.subr.bf16.mxu0 %v1885_v5 }
  0x4d   :  { %1718 = vmatpush3.bf16.msra.mxu1 %v1900_v12 }
  0x4e   :  { %1688 = vmatpush3.bf16.msra.mxu0 %v1885_v5  ;;  %1719 = vmatprep.subr.bf16.mxu1 %v1901_v13 }
  0x4f   :  { %1689 = vmatprep.subr.bf16.mxu0 %v1886_v6 }
  0x51   :  { %1720 = vmatpush3.bf16.msra.mxu1 %v1901_v13 }
  0x52   :  { %1690 = vmatpush3.bf16.msra.mxu0 %v1886_v6  ;;  %1721 = vmatprep.subr.bf16.mxu1 %v1902_v21 }
  0x53   :  { %1691 = vmatprep.subr.bf16.mxu0 %v1887_v9 }
  0x55   :  { %1722 = vmatpush3.bf16.msra.mxu1 %v1902_v21  ;;  %v1916_v21 = vld [vmem:[#allocation10 + $0x60] sm:$0xff]  }
  0x56   :  { %1692 = vmatpush3.bf16.msra.mxu0 %v1887_v9  ;;  %1723 = vmatprep.subr.bf16.mxu1 %v1903_v22 }
  0x57   :  { %1693 = vmatprep.subr.bf16.mxu0 %v1888_v11 }
  0x59   :  { %1724 = vmatpush3.bf16.msra.mxu1 %v1903_v22 }
  0x5a   :  { %1694 = vmatpush3.bf16.msra.mxu0 %v1888_v11  ;;  %1725 = vmatprep.subr.bf16.mxu1 %v1904_v23 }
  0x5d   :  { %1696 = vmatmul.mubr.bf16.vlgmr.msra.gmra.mxu0 %v1890_v14  ;;  %1726 = vmatpush3.bf16.msra.mxu1 %v1904_v23 }
  0x5e   :  { %1699 = vmatprep.mubr.bf16.mxu0 %v1891_v15 }
  0x65   :  { %1700 = vmatmul.mubr.bf16.gmra.mxu0 %v1892_v16 }
  0x66   :  { %1703 = vmatprep.mubr.bf16.mxu0 %v1893_v17  ;;  %v1905_v17 = vld [vmem:[#allocation7] sm:$0xff]  }
  0x6d   :  { %1704 = vmatmul.mubr.bf16.gmra.mxu0 %v1894_v18  ;;  %v1913_v18 = vld [vmem:[#allocation10 + $0x78] sm:$0xff]  }
  0x6e   :  { %1707 = vmatprep.mubr.bf16.mxu0 %v1895_v19  ;;  %v1914_v19 = vld [vmem:[#allocation10 + $0x70] sm:$0xff]   ;;  %1775 = vmatprep.subr.bf16.mxu1 %v1913_v18 }
  0x75   :  { %1708 = vmatmul.mubr.bf16.gmra.mxu0 %v1896_v20  ;;  %v1915_v20 = vld [vmem:[#allocation10 + $0x68] sm:$0xff]  }
  0x76   :  { %1759 = vmatprep.mubr.bf16.mxu0 %v1905_v17  ;;  %v1909_v17 = vld [vmem:[#allocation7 + $0x20] sm:$0xff]  }
 0x11d   :  { %v1697_v24 = vpop.f32.mrf.mxu0 }
 0x11e   :  { %v2157_v30 = vadd.f32 %v1697_v24, %v1522_v26 }
 0x11f   :  { %v268_v25 = vpop.f32.mrf.mxu0 }
 0x120   :  { %v2153_v28 = vadd.f32 %v1522_v26, %v268_v25  ;;  %v333_v37 = vmax.f32 %v2157_v30, 0.0 }
 0x121   :  { %v1698_v27 = vpop.f32.mrf.mxu0 }
 0x122   :  { %v2155_v29 = vadd.f32 %v1698_v27, %v1522_v26  ;;  %v331_v35 = vmax.f32 %v2153_v28, 0.0 }
 0x123   :  { %v271_v31 = vpop.f32.mrf.mxu0 }
 0x124   :  { %v2159_v32 = vadd.f32 %v1522_v26, %v271_v31  ;;  %v334_v33 = vmax.f32 %v2155_v29, 0.0 }
 0x125   :  { %v1701_v34 = vpop.f32.mrf.mxu0 }
 0x126   :  { %v332_v36 = vmax.f32 %v2159_v32, 0.0  ;;  %v396_v40 = vpack.c.bf16 %v334_v33, %v333_v37  ;;  %v2177_v44 = vadd.f32 %v1701_v34, %v1522_v26 }
 0x127   :  { %v284_v38 = vpop.f32.mrf.mxu0 }
 0x128   :  { %v395_v39 = vpack.c.bf16 %v332_v36, %v331_v35  ;;  %v2173_v42 = vadd.f32 %v1522_v26, %v284_v38  ;;  %v337_v51 = vmax.f32 %v2177_v44, 0.0 }
 0x129   :  { %v1702_v41 = vpop.f32.mrf.mxu0 }
 0x12a   :  { %v2175_v43 = vadd.f32 %v1702_v41, %v1522_v26  ;;  %1727 = vmatprep.mubr.bf16.mxu1 %v395_v39  ;;  %v335_v49 = vmax.f32 %v2173_v42, 0.0 }
 0x12b   :  { %v287_v45 = vpop.f32.mrf.mxu0  ;;  %1728 = vmatmul.mubr.bf16.vlgmr.msra.gmra.mxu1 %v396_v40 }
 0x12c   :  { %v2179_v46 = vadd.f32 %v1522_v26, %v287_v45  ;;  %v338_v47 = vmax.f32 %v2175_v43, 0.0  ;;  %1776 = vmatpush3.bf16.msra.mxu1 %v1913_v18  ;;  %v1910_v18 = vld [vmem:[#allocation7 + $0x28] sm:$0xff]  }
 0x12d   :  { %v1705_v48 = vpop.f32.mrf.mxu0  ;;  %1777 = vmatprep.subr.bf16.mxu1 %v1914_v19 }
 0x12e   :  { %v336_v50 = vmax.f32 %v2179_v46, 0.0  ;;  %v398_v54 = vpack.c.bf16 %v338_v47, %v337_v51  ;;  %v2197_v58 = vadd.f32 %v1705_v48, %v1522_v26 }
 0x12f   :  { %v300_v52 = vpop.f32.mrf.mxu0 }
 0x130   :  { %v397_v53 = vpack.c.bf16 %v336_v50, %v335_v49  ;;  %v2193_v56 = vadd.f32 %v1522_v26, %v300_v52  ;;  %v341_v1 = vmax.f32 %v2197_v58, 0.0  ;;  %1778 = vmatpush3.bf16.msra.mxu1 %v1914_v19  ;;  %v1911_v19 = vld [vmem:[#allocation7 + $0x30] sm:$0xff]   ;;  %v2299_v43 = vmul.f32 0.5, %v336_v50 }
 0x131   :  { %v1706_v55 = vpop.f32.mrf.mxu0  ;;  %1779 = vmatprep.subr.bf16.mxu1 %v1915_v20 }
 0x132   :  { %v2195_v57 = vadd.f32 %v1706_v55, %v1522_v26  ;;  %1731 = vmatprep.mubr.bf16.mxu1 %v397_v53  ;;  %v339_v63 = vmax.f32 %v2193_v56, 0.0 }
 0x133   :  { %v303_v59 = vpop.f32.mrf.mxu0  ;;  %1732 = vmatmul.mubr.bf16.gmra.mxu1 %v398_v54 }
 0x134   :  { %v2199_v60 = vadd.f32 %v1522_v26, %v303_v59  ;;  %v342_v61 = vmax.f32 %v2195_v57, 0.0  ;;  %1780 = vmatpush3.bf16.msra.mxu1 %v1915_v20  ;;  %v1912_v20 = vld [vmem:[#allocation7 + $0x38] sm:$0xff]  }
 0x135   :  { %v1709_v62 = vpop.f32.mrf.mxu0  ;;  %1781 = vmatprep.subr.bf16.mxu1 %v1916_v21 }
 0x136   :  { %v340_v0 = vmax.f32 %v2199_v60, 0.0  ;;  %v400_v4 = vpack.c.bf16 %v342_v61, %v341_v1  ;;  %v2217_v8 = vadd.f32 %v1709_v62, %v1522_v26 }
 0x137   :  { %v316_v2 = vpop.f32.mrf.mxu0 }
 0x138   :  { %v399_v3 = vpack.c.bf16 %v340_v0, %v339_v63  ;;  %v2213_v6 = vadd.f32 %v1522_v26, %v316_v2  ;;  %v345_v14 = vmax.f32 %v2217_v8, 0.0  ;;  %1782 = vmatpush3.bf16.msra.mxu1 %v1916_v21  ;;  %v1917_v21 = vld [vmem:[#allocation10 + $0x58] sm:$0xff]   ;;  %v2343_v57 = vmul.f32 0.5, %v340_v0 }
 0x139   :  { %v1710_v5 = vpop.f32.mrf.mxu0  ;;  %1783 = vmatprep.subr.bf16.mxu1 %v1917_v21 }
 0x13a   :  { %v2215_v7 = vadd.f32 %v1710_v5, %v1522_v26  ;;  %1735 = vmatprep.mubr.bf16.mxu1 %v399_v3  ;;  %v343_v12 = vmax.f32 %v2213_v6, 0.0 }
 0x13b   :  { %v319_v9 = vpop.f32.mrf.mxu0  ;;  %1736 = vmatmul.mubr.bf16.gmra.mxu1 %v400_v4 }
 0x13c   :  { %v2219_v10 = vadd.f32 %v1522_v26, %v319_v9  ;;  %v346_v11 = vmax.f32 %v2215_v7, 0.0  ;;  %v1906_v9 = vld [vmem:[#allocation7 + $0x8] sm:$0xff]   ;;  %1784 = vmatpush3.bf16.msra.mxu1 %v1917_v21 }
 0x13e   :  { %v344_v13 = vmax.f32 %v2219_v10, 0.0  ;;  %v402_v16 = vpack.c.bf16 %v346_v11, %v345_v14 }
 0x140   :  { %v401_v15 = vpack.c.bf16 %v344_v13, %v343_v12  ;;  %v2387_v7 = vmul.f32 0.5, %v344_v13 }
 0x142   :  { %1739 = vmatprep.mubr.bf16.mxu1 %v401_v15  ;;  %v1907_v15 = vld [vmem:[#allocation7 + $0x10] sm:$0xff]  }
 0x143   :  { %1740 = vmatmul.mubr.bf16.gmra.mxu1 %v402_v16  ;;  %v1908_v16 = vld [vmem:[#allocation7 + $0x18] sm:$0xff]  }
 0x1eb   :  { %v1729_v22 = vpop.f32.mrf.mxu1 }
 0x1ed   :  { %v501_v23 = vpop.f32.mrf.mxu1 }
 0x1ef   :  { %v1730_v24 = vpop.f32.mrf.mxu1 }
 0x1f0   :  { %v581_v4 = vpack.c.bf16 %v1730_v24, %v1729_v22  ;;  %v1918_v22 = vld [vmem:[#allocation10 + $0x50] sm:$0xff]   ;;  %v1920_v24 = vld [vmem:[#allocation10 + $0x40] sm:$0xff]  }
 0x1f1   :  { %v504_v25 = vpop.f32.mrf.mxu1  ;;  %1785 = vmatprep.subr.bf16.mxu1 %v1918_v22 }
 0x1f2   :  { %v580_v5 = vpack.c.bf16 %v504_v25, %v501_v23  ;;  %1786 = vmatpush3.bf16.msra.mxu1 %v1918_v22  ;;  %v1919_v23 = vld [vmem:[#allocation10 + $0x48] sm:$0xff]  }
 0x1f3   :  { %v1733_v26 = vpop.f32.mrf.mxu1  ;;  %1787 = vmatprep.subr.bf16.mxu1 %v1919_v23 }
 0x1f5   :  { %v517_v27 = vpop.f32.mrf.mxu1 }
 0x1f6   :  { %1788 = vmatpush3.bf16.msra.mxu1 %v1919_v23 }
 0x1f7   :  { %v1734_v31 = vpop.f32.mrf.mxu1  ;;  %1789 = vmatprep.subr.bf16.mxu1 %v1920_v24 }
 0x1f8   :  { %v583_v2 = vpack.c.bf16 %v1734_v31, %v1733_v26  ;;  %v2236_v26 = vld [vmem:[%s2494_s5] ss:$0 sm:$0xff] }
 0x1f9   :  { %v520_v34 = vpop.f32.mrf.mxu1 }
 0x1fa   :  { %v582_v3 = vpack.c.bf16 %v520_v34, %v517_v27  ;;  %1790 = vmatpush3.bf16.msra.mxu1 %v1920_v24 }
 0x1fb   :  { %v1737_v38 = vpop.f32.mrf.mxu1 }
 0x1fd   :  { %v533_v39 = vpop.f32.mrf.mxu1 }
 0x1ff   :  { %v1738_v40 = vpop.f32.mrf.mxu1 }
 0x200   :  { %v585_v59 = vpack.c.bf16 %v1738_v40, %v1737_v38  ;;  %v2246_v40 = vmul.f32 0.5, %v334_v33 }
 0x201   :  { %v536_v41 = vpop.f32.mrf.mxu1 }
 0x202   :  { %v584_v62 = vpack.c.bf16 %v536_v41, %v533_v39  ;;  %v2242_v39 = vmul.f32 0.5, %v331_v35 }
 0x203   :  { %v1741_v45 = vpop.f32.mrf.mxu1 }
 0x205   :  { %v549_v48 = vpop.f32.mrf.mxu1 }
 0x207   :  { %v1742_v52 = vpop.f32.mrf.mxu1 }
 0x208   :  { %v587_v53 = vpack.c.bf16 %v1742_v52, %v1741_v45  ;;  %v2251_v45 = vmul.f32 0.5, %v333_v37  ;;  %v2255_v52 = vmul.f32 0.5, %v332_v36 }
 0x209   :  { %v552_v54 = vpop.f32.mrf.mxu1 }
 0x20a   :  { %v586_v55 = vpack.c.bf16 %v552_v54, %v549_v48  ;;  %1743 = vmatprep.subr.bf16.mxu0 %v587_v53 }
 0x20b   :  { %1744 = vmatpush3.bf16.msra.mxu0 %v587_v53 }
 0x20c   :  { %1745 = vmatprep.subr.bf16.mxu0 %v586_v55 }
 0x20f   :  { %1746 = vmatpush3.bf16.msra.mxu0 %v586_v55 }
 0x210   :  { %1747 = vmatprep.subr.bf16.mxu0 %v585_v59 }
 0x213   :  { %1748 = vmatpush3.bf16.msra.mxu0 %v585_v59 }
 0x214   :  { %1749 = vmatprep.subr.bf16.mxu0 %v584_v62 }
 0x217   :  { %1750 = vmatpush3.bf16.msra.mxu0 %v584_v62 }
 0x218   :  { %1751 = vmatprep.subr.bf16.mxu0 %v583_v2 }
 0x21b   :  { %1752 = vmatpush3.bf16.msra.mxu0 %v583_v2 }
 0x21c   :  { %1753 = vmatprep.subr.bf16.mxu0 %v582_v3 }
 0x21f   :  { %1754 = vmatpush3.bf16.msra.mxu0 %v582_v3  ;;  %v2278_v3 = vmul.f32 0.5, %v335_v49 }
 0x220   :  { %1755 = vmatprep.subr.bf16.mxu0 %v581_v4 }
 0x223   :  { %1756 = vmatpush3.bf16.msra.mxu0 %v581_v4  ;;  %v2282_v4 = vmul.f32 0.5, %v338_v47 }
 0x224   :  { %1757 = vmatprep.subr.bf16.mxu0 %v580_v5 }
 0x227   :  { %1758 = vmatpush3.bf16.msra.mxu0 %v580_v5 }
 0x22a   :  { %1760 = vmatmul.mubr.bf16.vlgmr.msra.gmra.mxu0 %v1906_v9 }
 0x22b   :  { %1763 = vmatprep.mubr.bf16.mxu0 %v1907_v15  ;;  %v2291_v15 = vmul.f32 0.5, %v337_v51 }
 0x232   :  { %1764 = vmatmul.mubr.bf16.gmra.mxu0 %v1908_v16 }
 0x233   :  { %1767 = vmatprep.mubr.bf16.mxu0 %v1909_v17 }
 0x23a   :  { %1768 = vmatmul.mubr.bf16.gmra.mxu0 %v1910_v18 }
 0x23b   :  { %1771 = vmatprep.mubr.bf16.mxu0 %v1911_v19 }
 0x242   :  { %1772 = vmatmul.mubr.bf16.gmra.mxu0 %v1912_v20 }
 0x2ea   :  { %v1761_v25 = vpop.f32.mrf.mxu0 }
 0x2eb   :  { %v686_v34 = vadd.f32 %v1761_v25, %v2236_v26  ;;  %v2322_v25 = vmul.f32 0.5, %v339_v63 }
 0x2ec   :  { %v677_v27 = vpop.f32.mrf.mxu0 }
 0x2ed   :  { %v678_v31 = vadd.f32 %v2236_v26, %v677_v27  ;;  %v2265_v33 = vadd.f32 %v2251_v45, %v686_v34  ;;  %v2326_v27 = vmul.f32 0.5, %v342_v61 }
 0x2ee   :  { %v1762_v38 = vpop.f32.mrf.mxu0 }
 0x2ef   :  { %v689_v41 = vadd.f32 %v1762_v38, %v2236_v26  ;;  %v2258_v53 = vadd.f32 %v2242_v39, %v678_v31  ;;  %v774_v59 = vmax.f32 %v2265_v33, 0.0  ;;  %v2335_v38 = vmul.f32 0.5, %v341_v1 }
 0x2f0   :  { %v680_v48 = vpop.f32.mrf.mxu0 }
 0x2f1   :  { %v2261_v28 = vadd.f32 %v2246_v40, %v689_v41  ;;  %v681_v29 = vadd.f32 %v2236_v26, %v680_v48  ;;  %v772_v36 = vmax.f32 %v2258_v53, 0.0 }
 0x2f2   :  { %v1765_v35 = vpop.f32.mrf.mxu0 }
 0x2f3   :  { %v2268_v30 = vadd.f32 %v2255_v52, %v681_v29  ;;  %v775_v37 = vmax.f32 %v2261_v28, 0.0  ;;  %v702_v62 = vadd.f32 %v1765_v35, %v2236_v26 }
 0x2f4   :  { %v693_v32 = vpop.f32.mrf.mxu0 }
 0x2f5   :  { %v773_v54 = vmax.f32 %v2268_v30, 0.0  ;;  %v694_v55 = vadd.f32 %v2236_v26, %v693_v32  ;;  %v837_v42 = vpack.c.bf16 %v775_v37, %v774_v59  ;;  %v2309_v51 = vadd.f32 %v2291_v15, %v702_v62 }
 0x2f6   :  { %v1766_v2 = vpop.f32.mrf.mxu0 }
 0x2f7   :  { %v705_v5 = vadd.f32 %v1766_v2, %v2236_v26  ;;  %v836_v9 = vpack.c.bf16 %v773_v54, %v772_v36  ;;  %v2302_v47 = vadd.f32 %v2278_v3, %v694_v55  ;;  %v778_v22 = vmax.f32 %v2309_v51, 0.0 }
 0x2f8   :  { %v696_v49 = vpop.f32.mrf.mxu0 }
 0x2f9   :  { %v2305_v16 = vadd.f32 %v2282_v4, %v705_v5  ;;  %v697_v44 = vadd.f32 %v2236_v26, %v696_v49  ;;  %1791 = vmatprep.mubr.bf16.mxu1 %v836_v9  ;;  %v776_v19 = vmax.f32 %v2302_v47, 0.0  ;;  %v2366_v9 = vmul.f32 0.5, %v343_v12 }
 0x2fa   :  { %v1769_v17 = vpop.f32.mrf.mxu0  ;;  %1792 = vmatmul.mubr.bf16.vlgmr.msra.gmra.mxu1 %v837_v42  ;;  %v2370_v42 = vmul.f32 0.5, %v346_v11 }
 0x2fb   :  { %v2312_v18 = vadd.f32 %v2299_v43, %v697_v44  ;;  %v779_v46 = vmax.f32 %v2305_v16, 0.0  ;;  %v718_v23 = vadd.f32 %v1769_v17, %v2236_v26  ;;  %v2379_v17 = vmul.f32 0.5, %v345_v14 }
 0x2fc   :  { %v709_v50 = vpop.f32.mrf.mxu0 }
 0x2fd   :  { %v777_v20 = vmax.f32 %v2312_v18, 0.0  ;;  %v710_v21 = vadd.f32 %v2236_v26, %v709_v50  ;;  %v839_v56 = vpack.c.bf16 %v779_v46, %v778_v22  ;;  %v2353_v1 = vadd.f32 %v2335_v38, %v718_v23 }
 0x2fe   :  { %v1770_v24 = vpop.f32.mrf.mxu0 }
 0x2ff   :  { %v721_v31 = vadd.f32 %v1770_v24, %v2236_v26  ;;  %v838_v34 = vpack.c.bf16 %v777_v20, %v776_v19  ;;  %v2346_v61 = vadd.f32 %v2322_v25, %v710_v21  ;;  %v2502_v62 = vmax.f32 %v2353_v1, 0.0 }
 0x300   :  { %v712_v41 = vpop.f32.mrf.mxu0 }
 0x301   :  { %v2349_v63 = vadd.f32 %v2326_v27, %v721_v31  ;;  %v713_v58 = vadd.f32 %v2236_v26, %v712_v41  ;;  %1795 = vmatprep.mubr.bf16.mxu1 %v838_v34  ;;  %v2503_v35 = vmax.f32 %v2346_v61, 0.0  ;;  %v1921_v34 = vld [vmem:[#allocation7] sm:$0xff]   ;;  %v1929_v41 = vld [vmem:[#allocation12 + $0x38] sm:$0xff]  }
 0x302   :  { %v1773_v48 = vpop.f32.mrf.mxu0  ;;  %1796 = vmatmul.mubr.bf16.gmra.mxu1 %v839_v56  ;;  %1823 = vmatprep.mubr.bf16.mxu0 %v1921_v34  ;;  %v1930_v56 = vld [vmem:[#allocation12 + $0x30] sm:$0xff]  }
 0x303   :  { %v2356_v29 = vadd.f32 %v2343_v57, %v713_v58  ;;  %v783_v60 = vmax.f32 %v2349_v63, 0.0  ;;  %v734_v2 = vadd.f32 %v1773_v48, %v2236_v26  ;;  %1839 = vmatprep.subr.bf16.mxu1 %v1929_v41  ;;  %v1931_v58 = vld [vmem:[#allocation12 + $0x28] sm:$0xff]   ;;  %v1932_v48 = vld [vmem:[#allocation12 + $0x20] sm:$0xff]  }
 0x304   :  { %v725_v0 = vpop.f32.mrf.mxu0  ;;  %1840 = vmatpush3.bf16.msra.mxu1 %v1929_v41 }
 0x305   :  { %v2504_v32 = vmax.f32 %v2356_v29, 0.0  ;;  %v726_v55 = vadd.f32 %v2236_v26, %v725_v0  ;;  %v841_v6 = vpack.c.bf16 %v783_v60, %v2502_v62  ;;  %v2397_v14 = vadd.f32 %v2379_v17, %v734_v2  ;;  %1841 = vmatprep.subr.bf16.mxu1 %v1930_v56 }
 0x306   :  { %v1774_v5 = vpop.f32.mrf.mxu0 }
 0x307   :  { %v737_v49 = vadd.f32 %v1774_v5, %v2236_v26  ;;  %v840_v44 = vpack.c.bf16 %v2504_v32, %v2503_v35  ;;  %v2390_v11 = vadd.f32 %v2366_v9, %v726_v55  ;;  %v2498_v24 = vmax.f32 %v2397_v14, 0.0 }
 0x308   :  { %v728_v50 = vpop.f32.mrf.mxu0  ;;  %1842 = vmatpush3.bf16.msra.mxu1 %v1930_v56 }
 0x309   :  { %v2393_v12 = vadd.f32 %v2370_v42, %v737_v49  ;;  %v729_v8 = vadd.f32 %v2236_v26, %v728_v50  ;;  %1799 = vmatprep.mubr.bf16.mxu1 %v840_v44  ;;  %v2501_v13 = vmax.f32 %v2390_v11, 0.0  ;;  %1843 = vmatprep.subr.bf16.mxu1 %v1931_v58 }
 0x30a   :  { %1800 = vmatmul.mubr.bf16.gmra.mxu1 %v841_v6 }
 0x30b   :  { %v2400_v21 = vadd.f32 %v2387_v7, %v729_v8  ;;  %v2500_v10 = vmax.f32 %v2393_v12, 0.0 }
 0x30c   :  { %1844 = vmatpush3.bf16.msra.mxu1 %v1931_v58 }
 0x30d   :  { %v2499_v23 = vmax.f32 %v2400_v21, 0.0  ;;  %v843_v31 = vpack.c.bf16 %v2500_v10, %v2498_v24  ;;  %1845 = vmatprep.subr.bf16.mxu1 %v1932_v48 }
 0x30f   :  { %v842_v26 = vpack.c.bf16 %v2499_v23, %v2501_v13 }
 0x310   :  { %1846 = vmatpush3.bf16.msra.mxu1 %v1932_v48 }
 0x311   :  { %1803 = vmatprep.mubr.bf16.mxu1 %v842_v26 }
 0x312   :  { %1804 = vmatmul.mubr.bf16.gmra.mxu1 %v843_v31 }
 0x3ba   :  { %v1793_v0 = vpop.f32.mrf.mxu1 }
 0x3bc   :  { %v943_v55 = vpop.f32.mrf.mxu1 }
 0x3be   :  { %v1794_v2 = vpop.f32.mrf.mxu1 }
 0x3bf   :  { %v1023_v32 = vpack.c.bf16 %v1794_v2, %v1793_v0  ;;  %v1935_v0 = vld [vmem:[#allocation12 + $0x8] sm:$0xff]   ;;  %v2417_v2 = vld [vmem:[%s2494_s5 + $0x1] ss:$0 sm:$0xff] }
 0x3c0   :  { %v946_v5 = vpop.f32.mrf.mxu1 }
 0x3c2   :  { %v1797_v49 = vpop.f32.mrf.mxu1 }
 0x3c4   :  { %v959_v44 = vpop.f32.mrf.mxu1 }
 0x3c6   :  { %v1798_v50 = vpop.f32.mrf.mxu1 }
 0x3c7   :  { %v1025_v62 = vpack.c.bf16 %v1798_v50, %v1797_v49  ;;  %v1927_v49 = vld [vmem:[#allocation7 + $0x30] sm:$0xff]  }
 0x3c8   :  { %v962_v6 = vpop.f32.mrf.mxu1 }
 0x3c9   :  { %v1024_v35 = vpack.c.bf16 %v962_v6, %v959_v44 }
 0x3ca   :  { %v1801_v8 = vpop.f32.mrf.mxu1 }
 0x3cc   :  { %v975_v26 = vpop.f32.mrf.mxu1 }
 0x3ce   :  { %v1802_v31 = vpop.f32.mrf.mxu1 }
 0x3cf   :  { %v1027_v48 = vpack.c.bf16 %v1802_v31, %v1801_v8  ;;  %v1925_v8 = vld [vmem:[#allocation7 + $0x20] sm:$0xff]  }
 0x3d0   :  { %v978_v34 = vpop.f32.mrf.mxu1 }
 0x3d1   :  { %v1026_v13 = vpack.c.bf16 %v978_v34, %v975_v26 }
 0x3d2   :  { %v1805_v41 = vpop.f32.mrf.mxu1 }
 0x3d4   :  { %v991_v24 = vpop.f32.mrf.mxu1 }
 0x3d6   :  { %v1806_v56 = vpop.f32.mrf.mxu1 }
 0x3d7   :  { %v1029_v23 = vpack.c.bf16 %v1806_v56, %v1805_v41  ;;  %v1022_v41 = vpack.c.bf16 %v946_v5, %v943_v55  ;;  %v1936_v55 = vld [vmem:[#allocation12] sm:$0xff]  }
 0x3d8   :  { %v994_v10 = vpop.f32.mrf.mxu1 }
 0x3d9   :  { %v1028_v58 = vpack.c.bf16 %v994_v10, %v991_v24  ;;  %1807 = vmatprep.subr.bf16.mxu0 %v1029_v23  ;;  %v1922_v10 = vld [vmem:[#allocation7 + $0x8] sm:$0xff]   ;;  %v1924_v24 = vld [vmem:[#allocation7 + $0x18] sm:$0xff]  }
 0x3da   :  { %1808 = vmatpush3.bf16.msra.mxu0 %v1029_v23  ;;  %v1923_v23 = vld [vmem:[#allocation7 + $0x10] sm:$0xff]  }
 0x3db   :  { %1809 = vmatprep.subr.bf16.mxu0 %v1028_v58 }
 0x3de   :  { %1810 = vmatpush3.bf16.msra.mxu0 %v1028_v58 }
 0x3df   :  { %1811 = vmatprep.subr.bf16.mxu0 %v1027_v48 }
 0x3e2   :  { %1812 = vmatpush3.bf16.msra.mxu0 %v1027_v48 }
 0x3e3   :  { %1813 = vmatprep.subr.bf16.mxu0 %v1026_v13 }
 0x3e6   :  { %1814 = vmatpush3.bf16.msra.mxu0 %v1026_v13  ;;  %v1926_v13 = vld [vmem:[#allocation7 + $0x28] sm:$0xff]  }
 0x3e7   :  { %1815 = vmatprep.subr.bf16.mxu0 %v1025_v62 }
 0x3ea   :  { %1816 = vmatpush3.bf16.msra.mxu0 %v1025_v62  ;;  %v1928_v62 = vld [vmem:[#allocation7 + $0x38] sm:$0xff]  }
 0x3eb   :  { %1817 = vmatprep.subr.bf16.mxu0 %v1024_v35 }
 0x3ee   :  { %1818 = vmatpush3.bf16.msra.mxu0 %v1024_v35  ;;  %v1933_v35 = vld [vmem:[#allocation12 + $0x18] sm:$0xff]  }
 0x3ef   :  { %1819 = vmatprep.subr.bf16.mxu0 %v1023_v32  ;;  %1847 = vmatprep.subr.bf16.mxu1 %v1933_v35 }
 0x3f0   :  { %1848 = vmatpush3.bf16.msra.mxu1 %v1933_v35 }
 0x3f2   :  { %1820 = vmatpush3.bf16.msra.mxu0 %v1023_v32  ;;  %v1934_v32 = vld [vmem:[#allocation12 + $0x10] sm:$0xff]  }
 0x3f3   :  { %1821 = vmatprep.subr.bf16.mxu0 %v1022_v41  ;;  %1849 = vmatprep.subr.bf16.mxu1 %v1934_v32 }
 0x3f4   :  { %1850 = vmatpush3.bf16.msra.mxu1 %v1934_v32 }
 0x3f5   :  { %1851 = vmatprep.subr.bf16.mxu1 %v1935_v0 }
 0x3f6   :  { %1822 = vmatpush3.bf16.msra.mxu0 %v1022_v41 }
 0x3f8   :  { %1852 = vmatpush3.bf16.msra.mxu1 %v1935_v0 }
 0x3f9   :  { %1824 = vmatmul.mubr.bf16.vlgmr.msra.gmra.mxu0 %v1922_v10  ;;  %1853 = vmatprep.subr.bf16.mxu1 %v1936_v55 }
 0x3fa   :  { %1827 = vmatprep.mubr.bf16.mxu0 %v1923_v23 }
 0x3fc   :  { %1854 = vmatpush3.bf16.msra.mxu1 %v1936_v55 }
 0x401   :  { %1828 = vmatmul.mubr.bf16.gmra.mxu0 %v1924_v24 }
 0x402   :  { %1831 = vmatprep.mubr.bf16.mxu0 %v1925_v8 }
 0x409   :  { %1832 = vmatmul.mubr.bf16.gmra.mxu0 %v1926_v13 }
 0x40a   :  { %1835 = vmatprep.mubr.bf16.mxu0 %v1927_v49 }
 0x411   :  { %1836 = vmatmul.mubr.bf16.gmra.mxu0 %v1928_v62 }
 0x4b9   :  { %v1825_v5 = vpop.f32.mrf.mxu0 }
 0x4ba   :  { %v1129_v44 = vadd.f32 %v1825_v5, %v2417_v2 }
 0x4bb   :  { %v1120_v50 = vpop.f32.mrf.mxu0 }
 0x4bc   :  { %v1121_v6 = vadd.f32 %v2417_v2, %v1120_v50  ;;  %v1217_v56 = vadd.f32 %v1129_v44, %v2251_v45 }
 0x4bd   :  { %v1826_v26 = vpop.f32.mrf.mxu0 }
 0x4be   :  { %v1215_v31 = vadd.f32 %v1121_v6, %v2242_v39  ;;  %v1132_v34 = vadd.f32 %v1826_v26, %v2417_v2  ;;  %v1233_v13 = vmax.f32 %v1217_v56, 0.0 }
 0x4bf   :  { %v1123_v58 = vpop.f32.mrf.mxu0 }
 0x4c0   :  { %v1218_v48 = vadd.f32 %v1132_v34, %v2246_v40  ;;  %v1124_v41 = vadd.f32 %v2417_v2, %v1123_v58  ;;  %v1231_v23 = vmax.f32 %v1215_v31, 0.0 }
 0x4c1   :  { %v1829_v10 = vpop.f32.mrf.mxu0 }
 0x4c2   :  { %v1234_v24 = vmax.f32 %v1218_v48, 0.0  ;;  %v1216_v8 = vadd.f32 %v1124_v41, %v2255_v52  ;;  %v1145_v35 = vadd.f32 %v1829_v10, %v2417_v2  ;;  %v1263_v40 = vadd.f32 %v1231_v23, %v772_v36 }
 0x4c3   :  { %v1136_v49 = vpop.f32.mrf.mxu0  ;;  %v1265_v52 = vadd.f32 %v1233_v13, %v774_v59 }
 0x4c4   :  { %v1232_v62 = vmax.f32 %v1216_v8, 0.0  ;;  %v1137_v39 = vadd.f32 %v2417_v2, %v1136_v49  ;;  %v1266_v45 = vadd.f32 %v1234_v24, %v775_v37  ;;  %v1221_v50 = vadd.f32 %v1145_v35, %v2291_v15 }
 0x4c5   :  { %v1830_v32 = vpop.f32.mrf.mxu0 }
 0x4c6   :  { %v1264_v0 = vadd.f32 %v1232_v62, %v773_v54  ;;  %v1219_v55 = vadd.f32 %v1137_v39, %v2278_v3  ;;  %v1148_v5 = vadd.f32 %v1830_v32, %v2417_v2  ;;  %v1312_v6 = vpack.c.bf16 %v1266_v45, %v1265_v52 }
 0x4c7   :  { %v1139_v44 = vpop.f32.mrf.mxu0  ;;  %v1237_v3 = vmax.f32 %v1221_v50, 0.0  ;;  %v2505_v62 = vmax.f32 %v2356_v29, 0.0  ;;  %v2506_v45 = vmax.f32 %v2346_v61, 0.0 }
 0x4c8   :  { %v1140_v28 = vadd.f32 %v2417_v2, %v1139_v44  ;;  %v1311_v37 = vpack.c.bf16 %v1264_v0, %v1263_v40  ;;  %v1222_v53 = vadd.f32 %v1148_v5, %v2282_v4  ;;  %v1235_v54 = vmax.f32 %v1219_v55, 0.0 }
 0x4c9   :  { %v1833_v36 = vpop.f32.mrf.mxu0  ;;  %v1269_v10 = vadd.f32 %v1237_v3, %v778_v22  ;;  %v2507_v0 = vmax.f32 %v2353_v1, 0.0 }
 0x4ca   :  { %v1220_v30 = vadd.f32 %v1140_v28, %v2299_v43  ;;  %1855 = vmatprep.mubr.bf16.mxu1 %v1311_v37  ;;  %v1238_v33 = vmax.f32 %v1222_v53, 0.0  ;;  %v1161_v31 = vadd.f32 %v1833_v36, %v2417_v2  ;;  %v1267_v58 = vadd.f32 %v1235_v54, %v776_v19  ;;  %v1574_v54 = vld [vmem:[%s2496_s7] ss:$0 sm:$0xff]  ;;  %s2072_s7 = smov [#allocation13]  }
 0x4cb   :  { %v1152_v59 = vpop.f32.mrf.mxu0  ;;  %1856 = vmatmul.mubr.bf16.vlgmr.msra.gmra.mxu1 %v1312_v6  ;;  %v2508_v37 = vmax.f32 %v2390_v11, 0.0  ;;  %v2509_v6 = vmax.f32 %v2393_v12, 0.0  ;;  %s1508_s11 = sshll.u32 %s2072_s7, 4  ;;  %s1509_s11 = int_to_ptr.vmem [resolvable:$true] %s1508_s11 }
 0x4cc   :  { %v1236_v26 = vmax.f32 %v1220_v30, 0.0  ;;  %v1153_v15 = vadd.f32 %v2417_v2, %v1152_v59  ;;  %v1270_v56 = vadd.f32 %v1238_v33, %v779_v46  ;;  %v1225_v23 = vadd.f32 %v1161_v31, %v2335_v38  ;;  %s2037_s12 = scalar_lea.vmem %s1509_s11, 2048  ;;  %p2042_p12 = scmp.lt.s32.totalorder %s1509_s11, %s1509_s11 }
 0x4cd   :  { %v1834_v34 = vpop.f32.mrf.mxu0  ;;  %p2038_p11 = scmp.ne.s32.totalorder %s1509_s11, %s2037_s12  ;;  %p2043_p13 = scmp.lt.s32.totalorder %s2037_s12, %s2037_s12 }
 0x4ce   :  { %v1268_v4 = vadd.f32 %v1236_v26, %v777_v20  ;;  %v1164_v43 = vadd.f32 %v1834_v34, %v2417_v2  ;;  %v1223_v48 = vadd.f32 %v1153_v15, %v2322_v25  ;;  %v1314_v13 = vpack.c.bf16 %v1270_v56, %v1269_v10 }
 0x4cf   :  { %v1155_v41 = vpop.f32.mrf.mxu0  ;;  %v1241_v25 = vmax.f32 %v1225_v23, 0.0  ;;  %p2044_p0 = por %p2043_p13, %p2042_p12 }
 0x4d0   :  { %v1226_v24 = vadd.f32 %v1164_v43, %v2326_v27  ;;  %v1156_v16 = vadd.f32 %v2417_v2, %v1155_v41  ;;  %v1313_v18 = vpack.c.bf16 %v1268_v4, %v1267_v58  ;;  %v1239_v47 = vmax.f32 %v1223_v48, 0.0 }
 0x4d1   :  { %v1837_v46 = vpop.f32.mrf.mxu0  ;;  %v1273_v52 = vadd.f32 %v1241_v25, %v2507_v0  ;;  %p2045_p1 = pnand %p2044_p0, %p2038_p11 }
 0x4d2   :  { %v1242_v20 = vmax.f32 %v1226_v24, 0.0  ;;  %v1224_v8 = vadd.f32 %v1156_v16, %v2343_v57  ;;  %1859 = vmatprep.mubr.bf16.mxu1 %v1313_v18  ;;  %v1177_v51 = vadd.f32 %v1837_v46, %v2417_v2  ;;  %v1271_v32 = vadd.f32 %v1239_v47, %v2506_v45 }
 0x4d3   :  { %v1168_v19 = vpop.f32.mrf.mxu0  ;;  %1860 = vmatmul.mubr.bf16.gmra.mxu1 %v1314_v13 }
 0x4d4   :  { %v1240_v49 = vmax.f32 %v1224_v8, 0.0  ;;  %v1169_v22 = vadd.f32 %v2417_v2, %v1168_v19  ;;  %v1274_v27 = vadd.f32 %v1242_v20, %v783_v60  ;;  %v1229_v55 = vadd.f32 %v1177_v51, %v2379_v17 }
 0x4d5   :  { %v1838_v38 = vpop.f32.mrf.mxu0 }
 0x4d6   :  { %v1272_v35 = vadd.f32 %v1240_v49, %v2505_v62  ;;  %v1227_v57 = vadd.f32 %v1169_v22, %v2366_v9  ;;  %v1180_v39 = vadd.f32 %v1838_v38, %v2417_v2  ;;  %v1316_v50 = vpack.c.bf16 %v1274_v27, %v1273_v52 }
 0x4d7   :  { %v1171_v40 = vpop.f32.mrf.mxu0  ;;  %v1245_v28 = vmax.f32 %v1229_v55, 0.0 }
 0x4d8   :  { %v1230_v5 = vadd.f32 %v1180_v39, %v2370_v42  ;;  %v1172_v63 = vadd.f32 %v2417_v2, %v1171_v40  ;;  %v1315_v60 = vpack.c.bf16 %v1272_v35, %v1271_v32  ;;  %v1243_v29 = vmax.f32 %v1227_v57, 0.0 }
 0x4d9   :  { %v2510_v42 = vmax.f32 %v2400_v21, 0.0  ;;  %v2511_v2 = vmax.f32 %v2397_v14, 0.0 }
 0x4da   :  { %v1246_v44 = vmax.f32 %v1230_v5, 0.0  ;;  %v1228_v9 = vadd.f32 %v1172_v63, %v2387_v7  ;;  %1863 = vmatprep.mubr.bf16.mxu1 %v1315_v60  ;;  %v1275_v1 = vadd.f32 %v1243_v29, %v2508_v37 }
 0x4db   :  { %1864 = vmatmul.mubr.bf16.gmra.mxu1 %v1316_v50  ;;  %v1277_v36 = vadd.f32 %v1245_v28, %v2511_v2 }
 0x4dc   :  { %v1244_v61 = vmax.f32 %v1228_v9, 0.0  ;;  %v1278_v17 = vadd.f32 %v1246_v44, %v2509_v6 }
 0x4de   :  { %v1276_v53 = vadd.f32 %v1244_v61, %v2510_v42  ;;  %v1318_v7 = vpack.c.bf16 %v1278_v17, %v1277_v36 }
 0x4e0   :  { %v1317_v30 = vpack.c.bf16 %v1276_v53, %v1275_v1 }
 0x4e2   :  { %1867 = vmatprep.mubr.bf16.mxu1 %v1317_v30 }
 0x4e3   :  { %1868 = vmatmul.mubr.bf16.gmra.mxu1 %v1318_v7 }
 0x58b   :  { %v1857_v33 = vpop.f32.mrf.mxu1 }
 0x58c   :  { %v1433_v11 = vadd.f32 %v1857_v33, %v1574_v54 }
 0x58d   :  { %v1424_v59 = vpop.f32.mrf.mxu1 }
 0x58e   :  { %1489 = vst [vmem:[#allocation13 + $0x10] sm:$0xff] %v1433_v11  ;;  %v1425_v12 = vadd.f32 %v1574_v54, %v1424_v59 }
 0x58f   :  { %v1858_v3 = vpop.f32.mrf.mxu1 }
 0x590   :  { %1487 = vst [vmem:[#allocation13] sm:$0xff] %v1425_v12  ;;  %v1436_v21 = vadd.f32 %v1858_v3, %v1574_v54 }
 0x591   :  { %v1427_v26 = vpop.f32.mrf.mxu1 }
 0x592   :  { %1490 = vst [vmem:[#allocation13 + $0x18] sm:$0xff] %v1436_v21  ;;  %v1428_v14 = vadd.f32 %v1574_v54, %v1427_v26 }
 0x593   :  { %v1861_v31 = vpop.f32.mrf.mxu1 }
 0x594   :  { %1488 = vst [vmem:[#allocation13 + $0x8] sm:$0xff] %v1428_v14  ;;  %v1449_v15 = vadd.f32 %v1861_v31, %v1574_v54 }
 0x595   :  { %v1440_v34 = vpop.f32.mrf.mxu1 }
 0x596   :  { %1493 = vst [vmem:[#allocation13 + $0x30] sm:$0xff] %v1449_v15  ;;  %v1441_v56 = vadd.f32 %v1574_v54, %v1440_v34 }
 0x597   :  { %v1862_v4 = vpop.f32.mrf.mxu1 }
 0x598   :  { %1491 = vst [vmem:[#allocation13 + $0x20] sm:$0xff] %v1441_v56  ;;  %v1452_v43 = vadd.f32 %v1862_v4, %v1574_v54 }
 0x599   :  { %v1443_v58 = vpop.f32.mrf.mxu1 }
 0x59a   :  { %1494 = vst [vmem:[#allocation13 + $0x38] sm:$0xff] %v1452_v43  ;;  %v1444_v48 = vadd.f32 %v1574_v54, %v1443_v58 }
 0x59b   :  { %v1865_v41 = vpop.f32.mrf.mxu1 }
 0x59c   :  { %1492 = vst [vmem:[#allocation13 + $0x28] sm:$0xff] %v1444_v48  ;;  %v1465_v10 = vadd.f32 %v1865_v41, %v1574_v54 }
 0x59d   :  { %v1456_v23 = vpop.f32.mrf.mxu1 }
 0x59e   :  { %1497 = vst [vmem:[#allocation13 + $0x50] sm:$0xff] %v1465_v10  ;;  %v1457_v24 = vadd.f32 %v1574_v54, %v1456_v23 }
 0x59f   :  { %v1866_v16 = vpop.f32.mrf.mxu1 }
 0x5a0   :  { %1495 = vst [vmem:[#allocation13 + $0x40] sm:$0xff] %v1457_v24  ;;  %v1468_v46 = vadd.f32 %v1866_v16, %v1574_v54 }
 0x5a1   :  { %v1459_v18 = vpop.f32.mrf.mxu1 }
 0x5a2   :  { %1498 = vst [vmem:[#allocation13 + $0x58] sm:$0xff] %v1468_v46  ;;  %v1460_v20 = vadd.f32 %v1574_v54, %v1459_v18 }
 0x5a3   :  { %v1869_v8 = vpop.f32.mrf.mxu1 }
 0x5a4   :  { %1496 = vst [vmem:[#allocation13 + $0x48] sm:$0xff] %v1460_v20  ;;  %v1481_v13 = vadd.f32 %v1869_v8, %v1574_v54 }
 0x5a5   :  { %v1472_v47 = vpop.f32.mrf.mxu1 }
 0x5a6   :  { %1501 = vst [vmem:[#allocation13 + $0x70] sm:$0xff] %v1481_v13  ;;  %v1473_v19 = vadd.f32 %v1574_v54, %v1472_v47 }
 0x5a7   :  { %v1870_v25 = vpop.f32.mrf.mxu1 }
 0x5a8   :  { %1499 = vst [vmem:[#allocation13 + $0x60] sm:$0xff] %v1473_v19  ;;  %v1484_v49 = vadd.f32 %v1870_v25, %v1574_v54 }
 0x5a9   :  { %v1475_v51 = vpop.f32.mrf.mxu1 }
 0x5aa   :  { %1502 = vst [vmem:[#allocation13 + $0x78] sm:$0xff] %v1484_v49  ;;  %v1476_v22 = vadd.f32 %v1574_v54, %v1475_v51 }
 0x5ac   :  { %1500 = vst [vmem:[#allocation13 + $0x68] sm:$0xff] %v1476_v22 }
 0x5ad   :  { %2048 = shalt.err (!%p2045_p1)
}
 0x5ae   :  { %s2073_s13 = smov 128   ;;  %s2074_s14 = smov 8  }
 0x5af   :  { %1514 = dma.vmem_to_hbm [thread:$0]  %s1509_s11, 2048, %s2497_s8, [#allocation6], %s2073_s13, %s2073_s13, %s2074_s14  }
 0x5b0   :  { %2063 = dma.done.wait [#allocation6], 2048  }
 0x5b1   :  { %2064 = vsyncadd [#allocation6], 4294965248 }
 0x5b2   :  { %1518 = vsyncpa [#allocation5], 1 }
 0x5b3   :  { %1519 = vsyncpa [#allocation8], 1 }
 0x5b4   :  { %1520 = vsyncpa [#allocation11], 1 }
 0x5b5   :  { %1521 = vsyncpa [#allocation6], 1 }

</bundles_post_ra>
